<compile_context>
chip_gen: v7x
topology: tpu7x:2x2x1
jax: 0.10.0
libtpu: 0.0.40
codegen_flags: <defaults>
</compile_context>

<pallas_src>
import math
import numpy as np
import jax
import jax.numpy as jnp
from jax.experimental import pallas as pl
from jax.experimental.pallas import tpu as pltpu


# ----------------------------------------------------------------------------
# Pallas kernel
# ----------------------------------------------------------------------------
def make_tsct_kernel(L, Nblk, BB, ks, pad_c, kt, pad_t, head_dtype):
    """Kernel closure over static shape / conv parameters.

    Working layout inside the kernel: everything is (L, Nblk) with Nblk = BB*C packed
    on the lane axis (column index = b_local*C + c), so VPU/XLU work is lane-dense.
    """

    def kernel(x_ref, dw_w_ref, dw_b_ref, w1_ref, w2_ref, wt_ref,
               pool_ref, expand_ref, ws_ref, wd_ref, bsum_ref, out_ref):
        x = x_ref[...]                                    # (L, Nblk)
        dw_w = dw_w_ref[...]                              # (ks, Nblk) pre-tiled weights
        l_idx = jax.lax.broadcasted_iota(jnp.int32, (L, 1), 0)

        def same_conv_taps(v, tap_w, k_taps, pad):
            """Zero-padded 'same' conv along L via XLU roll + mask (no L^2 matrix)."""
            acc = jnp.zeros(v.shape, jnp.float32)
            for k in range(k_taps):
                s = k - pad
                if s == 0:
                    tap = v
                else:
                    mask = (l_idx + s >= 0) & (l_idx + s < L)
                    tap = jnp.where(mask, pltpu.roll(v, (-s) % L, 0), 0.0)
                acc = acc + tap * tap_w(k)
            return acc

        # ---- depthwise moving-mean conv (groups=C, padding='same', bias) ----
        mm = same_conv_taps(x, lambda k: dw_w[k:k + 1, :], ks, pad_c) + dw_b_ref[...]

        # ---- channel gate: mean over L -> Linear -> ReLU -> Linear -> Sigmoid ----
        # per-batch FC applied in the lane-packed layout via block-diagonal weights
        y = jnp.mean(mm, axis=0, keepdims=True)                               # (1, Nblk)
        h = jnp.maximum(
            jnp.dot(y, w1_ref[...], preferred_element_type=jnp.float32), 0.0)  # (1, BB*Cr)
        wc = jax.nn.sigmoid(
            jnp.dot(h, w2_ref[...], preferred_element_type=jnp.float32))       # (1, Nblk)
        cm = mm * wc                                                            # (L, Nblk)

        # ---- temporal gate: per-batch mean over C (one-hot matmul) -> kt-tap 'same'
        #      conv along L -> sigmoid -> broadcast back (one-hot matmul) ----
        t = jnp.dot(cm, pool_ref[...], preferred_element_type=jnp.float32)      # (L, BB)
        w_temp = jax.nn.sigmoid(same_conv_taps(t, lambda k: wt_ref[k], kt, pad_t))
        w_full = jnp.dot(w_temp, expand_ref[...],
                         preferred_element_type=jnp.float32)                    # (L, Nblk)
        tm = w_full * cm                                                         # trend

        # ---- fused seasonal/trend heads: two accumulating MXU dots, M = BB*C ----
        #   Ws@(x - tm) + bs + Wt@tm + bt == x^T@Ws^T + tm^T@(Wt-Ws)^T + (bs+bt)
        dims = (((0,), (0,)), ((), ()))
        acc = jax.lax.dot_general(x.astype(head_dtype), ws_ref[...], dims,
                                  preferred_element_type=jnp.float32)           # (Nblk, Pp)
        acc = acc + jax.lax.dot_general(tm.astype(head_dtype), wd_ref[...], dims,
                                        preferred_element_type=jnp.float32)
        out_ref[...] = acc + bsum_ref[...]

    return kernel


# ----------------------------------------------------------------------------
# Wrapper
# ----------------------------------------------------------------------------
def _pick_block_b(B, C, target_lanes=256):
    """Pick the batch block: BB*C must be a multiple of 128 (lane-dense) unless BB==B,
    big enough to fill the vregs / MXU rows, and (when possible) leave >=2 grid steps
    so both v7x TensorCores get work (v5e/v6e have a single TC, no harm there)."""
    divs = [d for d in range(1, B + 1) if B % d == 0]
    legal = [d for d in divs if d == B or (d * C) % 128 == 0]
    for need_two_steps in (True, False):
        cands = [d for d in legal
                 if d * C >= target_lanes and (B // d >= 2 or not need_two_steps)]
        if cands:
            return min(cands)
    return max(legal)


def tsctnet_forward(x, params, *, block_b=None, head_dtype=jnp.bfloat16,
                    target_lanes=256):
    """x: (B, seq_len, ch_in) -> (B, ch_in, pred_len), matching TSCTNet.forward."""
    B, L, C = x.shape
    ks = params["dw_w"].shape[0]
    kt = params["wt"].shape[0]
    Cr = params["w1T"].shape[1]
    P = params["wsT"].shape[1]
    pad_c = (ks - 1) // 2
    pad_t = (kt - 1) // 2

    BB = block_b if block_b is not None else _pick_block_b(B, C, target_lanes)
    assert B % BB == 0 and (BB == B or (BB * C) % 128 == 0), (B, BB, C)
    Nblk = BB * C
    P_pad = ((P + 127) // 128) * 128        # lane-dense (unmasked) output stores

    # lane-dense packing: batch*channel on the lane axis (single wrapper transpose)
    x_packed = jnp.transpose(x, (1, 0, 2)).reshape(L, B * C).astype(jnp.float32)

    eye = jnp.eye(BB, dtype=jnp.float32)
    dw_w_t = jnp.tile(params["dw_w"].astype(jnp.float32), (1, BB))        # (ks, Nblk)
    dw_b_t = jnp.tile(params["dw_b"].astype(jnp.float32), (1, BB))        # (1, Nblk)
    w1_blk = jnp.kron(eye, params["w1T"].astype(jnp.float32))             # (Nblk, BB*Cr)
    w2_blk = jnp.kron(eye, params["w2T"].astype(jnp.float32))             # (BB*Cr, Nblk)
    pool_m = jnp.kron(eye, jnp.full((C, 1), 1.0 / C, jnp.float32))        # (Nblk, BB)
    expand_m = jnp.kron(eye, jnp.ones((1, C), jnp.float32))               # (BB, Nblk)
    wt_smem = params["wt"].astype(jnp.float32).reshape(kt)                # SMEM scalars

    def pad_p(a):
        return jnp.pad(a, ((0, 0), (0, P_pad - P)))

    ws_p = pad_p(params["wsT"]).astype(head_dtype)                        # (L, P_pad)
    wd_p = pad_p(params["wdT"]).astype(head_dtype)                        # (L, P_pad)
    bsum_p = pad_p(params["bsum"]).astype(jnp.float32)                    # (1, P_pad)

    # explicit VMEM budget (double-buffered x/out + params + live intermediates);
    # keep BB sized so this stays well under v7x's 64 MiB
    head_bytes = jnp.dtype(head_dtype).itemsize
    bytes_est = 4 * (2 * (L * Nblk + Nblk * P_pad)
                     + 2 * (ks * Nblk + Nblk + 2 * Nblk * BB * Cr
                            + 2 * Nblk * BB + P_pad)
                     + 8 * L * Nblk) + 4 * L * P_pad * head_bytes
    vmem_limit = int(min(max(2 * bytes_est, 32 * 1024 * 1024), 100 * 1024 * 1024))

    kernel = make_tsct_kernel(L, Nblk, BB, ks, pad_c, kt, pad_t, head_dtype)

    out_flat = pl.pallas_call(
        kernel,
        out_shape=jax.ShapeDtypeStruct((B * C, P_pad), jnp.float32),
        grid_spec=pltpu.PrefetchScalarGridSpec(
            num_scalar_prefetch=0,
            grid=(B // BB,),
            in_specs=[
                pl.BlockSpec((L, Nblk), lambda i: (0, i)),           # x slab (lane-packed)
                pl.BlockSpec((ks, Nblk), lambda i: (0, 0)),          # depthwise weights
                pl.BlockSpec((1, Nblk), lambda i: (0, 0)),           # depthwise bias
                pl.BlockSpec((Nblk, BB * Cr), lambda i: (0, 0)),     # channel-gate W1 blkdiag
                pl.BlockSpec((BB * Cr, Nblk), lambda i: (0, 0)),     # channel-gate W2 blkdiag
                pl.BlockSpec(memory_space=pltpu.MemorySpace.SMEM),   # temporal taps (kt,)
                pl.BlockSpec((Nblk, BB), lambda i: (0, 0)),          # per-batch mean matrix
                pl.BlockSpec((BB, Nblk), lambda i: (0, 0)),          # per-batch expand matrix
                pl.BlockSpec((L, P_pad), lambda i: (0, 0)),          # Ws^T (padded)
                pl.BlockSpec((L, P_pad), lambda i: (0, 0)),          # (Wt-Ws)^T (padded)
                pl.BlockSpec((1, P_pad), lambda i: (0, 0)),          # bs + bt (padded)
            ],
            out_specs=pl.BlockSpec((Nblk, P_pad), lambda i: (i, 0)),
        ),
        compiler_params=pltpu.CompilerParams(
            dimension_semantics=("parallel",),
            vmem_limit_bytes=vmem_limit),
    )(x_packed, dw_w_t, dw_b_t, w1_blk, w2_blk, wt_smem, pool_m, expand_m,
      ws_p, wd_p, bsum_p)

    # row n = b*C + c  ->  free reshape to the PyTorch output layout
    return out_flat[:, :P].reshape(B, C, P)


# ----------------------------------------------------------------------------
# Deterministic parameter construction (mirrors the torch __init__ shapes)
# ----------------------------------------------------------------------------
def build_params(key, C, ks, r, L, P, is_adapt, b=1, gama=2):
    # temporal_gate kernel size, exactly as in the torch module
    kt = int(abs((math.log(C, 2) + b) / gama))
    if is_adapt:
        if kt % 2 == 0:
            kt = kt + 1
    else:
        kt = ks

    keys = jax.random.split(key, 9)
    Cr = C // r
    # TODO(synk): channel_gate(reduction=False) branch (Linear(C,C)+ReLU+Sigmoid)
    #             is not built here; this script exercises reduction=True.
    torch_params = dict(
        dw_weight=jax.random.normal(keys[0], (C, ks), jnp.float32) * 0.3,  # Conv1d (C,1,ks)
        dw_bias=jax.random.normal(keys[1], (C,), jnp.float32) * 0.1,
        w1=jax.random.normal(keys[2], (Cr, C), jnp.float32) * 0.3,         # Linear(C, C//r)
        w2=jax.random.normal(keys[3], (C, Cr), jnp.float32) * 0.3,         # Linear(C//r, C)
        wt=jax.random.normal(keys[4], (kt,), jnp.float32) * 0.5,           # Conv1d (1,1,kt)
        ws=jax.random.normal(keys[5], (P, L), jnp.float32) * 0.2,          # Linear_Seasonal
        bs=jax.random.normal(keys[6], (P,), jnp.float32) * 0.1,
        wtl=jax.random.normal(keys[7], (P, L), jnp.float32) * 0.2,         # Linear_Trend
        bt=jax.random.normal(keys[8], (P,), jnp.float32) * 0.1,
    )

    kernel_params = dict(
        dw_w=torch_params["dw_weight"].T,                   # (ks, C)
        dw_b=torch_params["dw_bias"].reshape(1, C),         # (1, C)
        w1T=torch_params["w1"].T,                           # (C, Cr)
        w2T=torch_params["w2"].T,                           # (Cr, C)
        wt=torch_params["wt"],                              # (kt,)
        wsT=torch_params["ws"].T,                           # (L, P)
        wdT=(torch_params["wtl"] - torch_params["ws"]).T,   # (L, P)
        bsum=(torch_params["bs"] + torch_params["bt"]).reshape(1, P),
    )
    return kernel_params, torch_params, kt


# ----------------------------------------------------------------------------
# Pure-JAX reference (follows the torch code / layouts) for validation
# ----------------------------------------------------------------------------
def ref_forward(x, tp, ks, kt):
    B, L, C = x.shape
    xp = jnp.transpose(x, (0, 2, 1))                              # (B, C, L)
    pl_, pr_ = (ks - 1) // 2, (ks - 1) - (ks - 1) // 2
    xpp = jnp.pad(xp, ((0, 0), (0, 0), (pl_, pr_)))
    mm = jnp.zeros((B, C, L), jnp.float32) + tp["dw_bias"][None, :, None]
    for k in range(ks):
        mm = mm + xpp[:, :, k:k + L] * tp["dw_weight"][None, :, k:k + 1]
    y = jnp.mean(mm, axis=2)                                      # (B, C)
    h = jnp.maximum(y @ tp["w1"].T, 0.0)
    wc = jax.nn.sigmoid(h @ tp["w2"].T)                           # (B, C)
    cg = mm * wc[:, :, None]
    cm = jnp.transpose(cg, (0, 2, 1))                             # (B, L, C)
    t = jnp.mean(cm, axis=2)                                      # (B, L)
    plt_, prt_ = (kt - 1) // 2, (kt - 1) - (kt - 1) // 2
    tpd = jnp.pad(t, ((0, 0), (plt_, prt_)))
    tc = jnp.zeros((B, L), jnp.float32)
    for k in range(kt):
        tc = tc + tp["wt"][k] * tpd[:, k:k + L]
    wts = jax.nn.sigmoid(tc)                                      # (B, L)
    tm = wts[:, :, None] * cm                                     # trend  (B, L, C)
    res = x - tm                                                  # seasonal
    s = jnp.transpose(res, (0, 2, 1))                             # (B, C, L)
    tr = jnp.transpose(tm, (0, 2, 1))
    out = (s @ tp["ws"].T + tp["bs"][None, None, :]
           + tr @ tp["wtl"].T + tp["bt"][None, None, :])          # (B, C, P)
    return out


# ----------------------------------------------------------------------------
if __name__ == "__main__":
    # --- tiny sanity shapes (full batch fits in one lane-packed block) ---
    B, L, C, P = 2, 16, 8, 8          # batch, seq_len, ch_in, pred_len
    ks, r, reduction, is_adapt = 3, 2, True, True

    key = jax.random.PRNGKey(0)
    kx, kp, kx2, kp2 = jax.random.split(key, 4)
    kparams, torch_params, kt = build_params(kp, C, ks, r, L, P, is_adapt)
    x = jax.random.normal(kx, (B, L, C), jnp.float32)
    ref = ref_forward(x, torch_params, ks, kt)

    # exact-semantics check with f32 head operands
    out_f32 = jax.block_until_ready(tsctnet_forward(x, kparams, head_dtype=jnp.float32))
    assert out_f32.shape == (B, C, P), out_f32.shape
    np.testing.assert_allclose(np.asarray(out_f32), np.asarray(ref), rtol=2e-3, atol=2e-3)

    # production config: bf16 MXU operands for the heads (f32 accumulation)
    out_bf16 = jax.block_until_ready(tsctnet_forward(x, kparams))
    np.testing.assert_allclose(np.asarray(out_bf16), np.asarray(ref), rtol=3e-2, atol=3e-2)

    # --- lane-dense blocked path: BB*C = 128 lanes, grid of 2 steps ---
    B2, L2, C2, P2 = 32, 24, 8, 12
    kparams2, torch_params2, kt2 = build_params(kp2, C2, ks, r, L2, P2, is_adapt)
    x2 = jax.random.normal(kx2, (B2, L2, C2), jnp.float32)
    ref2 = ref_forward(x2, torch_params2, ks, kt2)
    out2 = jax.block_until_ready(tsctnet_forward(x2, kparams2, block_b=16))
    assert out2.shape == (B2, C2, P2), out2.shape
    np.testing.assert_allclose(np.asarray(out2), np.asarray(ref2), rtol=3e-2, atol=3e-2)

    print("KERNEL_OK")
</pallas_src>

<mosaic_0001>
module attributes {stable_mosaic.version = 11 : i64} {
  func.func @kernel(%arg0: i32, %arg1: memref<16x16xf32, #tpu.memory_space<vmem>>, %arg2: memref<3x16xf32, #tpu.memory_space<vmem>>, %arg3: memref<1x16xf32, #tpu.memory_space<vmem>>, %arg4: memref<16x8xf32, #tpu.memory_space<vmem>>, %arg5: memref<8x16xf32, #tpu.memory_space<vmem>>, %arg6: memref<3xf32, #tpu.memory_space<smem>>, %arg7: memref<16x2xf32, #tpu.memory_space<vmem>>, %arg8: memref<2x16xf32, #tpu.memory_space<vmem>>, %arg9: memref<16x128xf32, #tpu.memory_space<vmem>>, %arg10: memref<16x128xf32, #tpu.memory_space<vmem>>, %arg11: memref<1x128xf32, #tpu.memory_space<vmem>>, %arg12: memref<16x128xf32, #tpu.memory_space<vmem>>) attributes {dimension_semantics = [#tpu.dimension_semantics<parallel>], iteration_bounds = array<i64: 1>, scalar_prefetch = 0 : i64, scratch_operands = 0 : i64, tpu.core_type = #tpu.core_type<tc>, window_params = [{transform_indices = @transform_0, window_bounds = array<i64: 16, 16>}, {pipeline_mode = #tpu.pipeline_mode<synchronous>, transform_indices = @transform_1, window_bounds = array<i64: 3, 16>}, {pipeline_mode = #tpu.pipeline_mode<synchronous>, transform_indices = @transform_2, window_bounds = array<i64: 1, 16>}, {pipeline_mode = #tpu.pipeline_mode<synchronous>, transform_indices = @transform_3, window_bounds = array<i64: 16, 8>}, {pipeline_mode = #tpu.pipeline_mode<synchronous>, transform_indices = @transform_4, window_bounds = array<i64: 8, 16>}, {transform_indices = @transform_5, window_bounds = array<i64: 3>}, {pipeline_mode = #tpu.pipeline_mode<synchronous>, transform_indices = @transform_6, window_bounds = array<i64: 16, 2>}, {pipeline_mode = #tpu.pipeline_mode<synchronous>, transform_indices = @transform_7, window_bounds = array<i64: 2, 16>}, {pipeline_mode = #tpu.pipeline_mode<synchronous>, transform_indices = @transform_8, window_bounds = array<i64: 16, 128>}, {pipeline_mode = #tpu.pipeline_mode<synchronous>, transform_indices = @transform_9, window_bounds = array<i64: 16, 128>}, {pipeline_mode = #tpu.pipeline_mode<synchronous>, transform_indices = @transform_10, window_bounds = array<i64: 1, 128>}, {transform_indices = @transform_11, window_bounds = array<i64: 16, 128>}]} {
    %c0 = arith.constant 0 : index
    %c0_0 = arith.constant 0 : index
    %0 = vector.load %arg1[%c0, %c0_0] : memref<16x16xf32, #tpu.memory_space<vmem>>, vector<16x16xf32>
    %c0_1 = arith.constant 0 : index
    %c0_2 = arith.constant 0 : index
    %1 = vector.load %arg2[%c0_1, %c0_2] : memref<3x16xf32, #tpu.memory_space<vmem>>, vector<3x16xf32>
    %2 = tpu.iota {dimensions = array<i32: 0>} : vector<16x1xi32>
    %cst = arith.constant 0.000000e+00 : f32
    %3 = vector.broadcast %cst : f32 to vector<16x16xf32>
    %c-1_i32 = arith.constant -1 : i32
    %4 = vector.broadcast %c-1_i32 : i32 to vector<16x1xi32>
    %5 = arith.addi %2, %4 : vector<16x1xi32>
    %c0_i32 = arith.constant 0 : i32
    %6 = vector.broadcast %c0_i32 : i32 to vector<16x1xi32>
    %7 = arith.cmpi sge, %5, %6 : vector<16x1xi32>
    %c-1_i32_3 = arith.constant -1 : i32
    %8 = vector.broadcast %c-1_i32_3 : i32 to vector<16x1xi32>
    %9 = arith.addi %2, %8 : vector<16x1xi32>
    %c16_i32 = arith.constant 16 : i32
    %10 = vector.broadcast %c16_i32 : i32 to vector<16x1xi32>
    %11 = arith.cmpi slt, %9, %10 : vector<16x1xi32>
    %12 = arith.andi %7, %11 : vector<16x1xi1>
    %c1_i32 = arith.constant 1 : i32
    %13 = tpu.dynamic_rotate %0 by %c1_i32 dim 0 : vector<16x16xf32>, i32 -> vector<16x16xf32>
    %cst_4 = arith.constant 0.000000e+00 : f32
    %14 = vector.shape_cast %12 : vector<16x1xi1> to vector<16x1xi1>
    %15 = vector.broadcast %14 : vector<16x1xi1> to vector<16x16xi1>
    %16 = vector.broadcast %cst_4 : f32 to vector<16x16xf32>
    %17 = arith.select %15, %13, %16 : vector<16x16xi1>, vector<16x16xf32>
    %18 = vector.extract_strided_slice %1 {offsets = [0, 0], sizes = [1, 16], strides = [1, 1]} : vector<3x16xf32> to vector<1x16xf32>
    %19 = vector.broadcast %18 : vector<1x16xf32> to vector<16x16xf32>
    %20 = arith.mulf %17, %19 : vector<16x16xf32>
    %21 = arith.addf %3, %20 : vector<16x16xf32>
    %22 = vector.extract_strided_slice %1 {offsets = [1, 0], sizes = [1, 16], strides = [1, 1]} : vector<3x16xf32> to vector<1x16xf32>
    %23 = vector.broadcast %22 : vector<1x16xf32> to vector<16x16xf32>
    %24 = arith.mulf %0, %23 : vector<16x16xf32>
    %25 = arith.addf %21, %24 : vector<16x16xf32>
    %c1_i32_5 = arith.constant 1 : i32
    %26 = vector.broadcast %c1_i32_5 : i32 to vector<16x1xi32>
    %27 = arith.addi %2, %26 : vector<16x1xi32>
    %c0_i32_6 = arith.constant 0 : i32
    %28 = vector.broadcast %c0_i32_6 : i32 to vector<16x1xi32>
    %29 = arith.cmpi sge, %27, %28 : vector<16x1xi32>
    %c1_i32_7 = arith.constant 1 : i32
    %30 = vector.broadcast %c1_i32_7 : i32 to vector<16x1xi32>
    %31 = arith.addi %2, %30 : vector<16x1xi32>
    %c16_i32_8 = arith.constant 16 : i32
    %32 = vector.broadcast %c16_i32_8 : i32 to vector<16x1xi32>
    %33 = arith.cmpi slt, %31, %32 : vector<16x1xi32>
    %34 = arith.andi %29, %33 : vector<16x1xi1>
    %c15_i32 = arith.constant 15 : i32
    %35 = tpu.dynamic_rotate %0 by %c15_i32 dim 0 : vector<16x16xf32>, i32 -> vector<16x16xf32>
    %cst_9 = arith.constant 0.000000e+00 : f32
    %36 = vector.shape_cast %34 : vector<16x1xi1> to vector<16x1xi1>
    %37 = vector.broadcast %36 : vector<16x1xi1> to vector<16x16xi1>
    %38 = vector.broadcast %cst_9 : f32 to vector<16x16xf32>
    %39 = arith.select %37, %35, %38 : vector<16x16xi1>, vector<16x16xf32>
    %40 = vector.extract_strided_slice %1 {offsets = [2, 0], sizes = [1, 16], strides = [1, 1]} : vector<3x16xf32> to vector<1x16xf32>
    %41 = vector.broadcast %40 : vector<1x16xf32> to vector<16x16xf32>
    %42 = arith.mulf %39, %41 : vector<16x16xf32>
    %43 = arith.addf %25, %42 : vector<16x16xf32>
    %c0_10 = arith.constant 0 : index
    %c0_11 = arith.constant 0 : index
    %44 = vector.load %arg3[%c0_10, %c0_11] : memref<1x16xf32, #tpu.memory_space<vmem>>, vector<1x16xf32>
    %45 = vector.broadcast %44 : vector<1x16xf32> to vector<16x16xf32>
    %46 = arith.addf %43, %45 : vector<16x16xf32>
    %cst_12 = arith.constant dense<0.000000e+00> : vector<16xf32>
    %47 = vector.multi_reduction <add>, %46, %cst_12 [0] : vector<16x16xf32> to vector<16xf32>
    %48 = vector.shape_cast %47 : vector<16xf32> to vector<1x16xf32>
    %cst_13 = arith.constant 1.600000e+01 : f32
    %49 = vector.broadcast %cst_13 : f32 to vector<1x16xf32>
    %50 = arith.divf %48, %49 : vector<1x16xf32>
    %c0_14 = arith.constant 0 : index
    %c0_15 = arith.constant 0 : index
    %51 = vector.load %arg4[%c0_14, %c0_15] : memref<16x8xf32, #tpu.memory_space<vmem>>, vector<16x8xf32>
    %cst_16 = arith.constant dense<0.000000e+00> : vector<1x8xf32>
    %52 = tpu.matmul %50, %51, %cst_16 {dimension_numbers = #tpu.dot_dimension_numbers<[1], [0], [0], [1], [0, 0, 1, 1], [], []>} : vector<1x16xf32>, vector<16x8xf32>, vector<1x8xf32> -> vector<1x8xf32>
    %cst_17 = arith.constant 0.000000e+00 : f32
    %53 = vector.broadcast %cst_17 : f32 to vector<1x8xf32>
    %54 = arith.maximumf %52, %53 : vector<1x8xf32>
    %c0_18 = arith.constant 0 : index
    %c0_19 = arith.constant 0 : index
    %55 = vector.load %arg5[%c0_18, %c0_19] : memref<8x16xf32, #tpu.memory_space<vmem>>, vector<8x16xf32>
    %cst_20 = arith.constant dense<0.000000e+00> : vector<1x16xf32>
    %56 = tpu.matmul %54, %55, %cst_20 {dimension_numbers = #tpu.dot_dimension_numbers<[1], [0], [0], [1], [0, 0, 1, 1], [], []>} : vector<1x8xf32>, vector<8x16xf32>, vector<1x16xf32> -> vector<1x16xf32>
    %57 = arith.negf %56 : vector<1x16xf32>
    %58 = math.exp %57 : vector<1x16xf32>
    %cst_21 = arith.constant 1.000000e+00 : f32
    %59 = vector.broadcast %cst_21 : f32 to vector<1x16xf32>
    %60 = arith.addf %59, %58 : vector<1x16xf32>
    %61 = arith.divf %59, %60 : vector<1x16xf32>
    %62 = vector.broadcast %61 : vector<1x16xf32> to vector<16x16xf32>
    %63 = arith.mulf %46, %62 : vector<16x16xf32>
    %c0_22 = arith.constant 0 : index
    %c0_23 = arith.constant 0 : index
    %64 = vector.load %arg7[%c0_22, %c0_23] : memref<16x2xf32, #tpu.memory_space<vmem>>, vector<16x2xf32>
    %cst_24 = arith.constant dense<0.000000e+00> : vector<16x2xf32>
    %65 = tpu.matmul %63, %64, %cst_24 {dimension_numbers = #tpu.dot_dimension_numbers<[1], [0], [0], [1], [0, 0, 1, 1], [], []>} : vector<16x16xf32>, vector<16x2xf32>, vector<16x2xf32> -> vector<16x2xf32>
    %cst_25 = arith.constant 0.000000e+00 : f32
    %66 = vector.broadcast %cst_25 : f32 to vector<16x2xf32>
    %c-1_i32_26 = arith.constant -1 : i32
    %67 = vector.broadcast %c-1_i32_26 : i32 to vector<16x1xi32>
    %68 = arith.addi %2, %67 : vector<16x1xi32>
    %c0_i32_27 = arith.constant 0 : i32
    %69 = vector.broadcast %c0_i32_27 : i32 to vector<16x1xi32>
    %70 = arith.cmpi sge, %68, %69 : vector<16x1xi32>
    %c-1_i32_28 = arith.constant -1 : i32
    %71 = vector.broadcast %c-1_i32_28 : i32 to vector<16x1xi32>
    %72 = arith.addi %2, %71 : vector<16x1xi32>
    %c16_i32_29 = arith.constant 16 : i32
    %73 = vector.broadcast %c16_i32_29 : i32 to vector<16x1xi32>
    %74 = arith.cmpi slt, %72, %73 : vector<16x1xi32>
    %75 = arith.andi %70, %74 : vector<16x1xi1>
    %c1_i32_30 = arith.constant 1 : i32
    %76 = tpu.dynamic_rotate %65 by %c1_i32_30 dim 0 : vector<16x2xf32>, i32 -> vector<16x2xf32>
    %cst_31 = arith.constant 0.000000e+00 : f32
    %77 = vector.shape_cast %75 : vector<16x1xi1> to vector<16x1xi1>
    %78 = vector.broadcast %77 : vector<16x1xi1> to vector<16x2xi1>
    %79 = vector.broadcast %cst_31 : f32 to vector<16x2xf32>
    %80 = arith.select %78, %76, %79 : vector<16x2xi1>, vector<16x2xf32>
    %c0_32 = arith.constant 0 : index
    %81 = memref.load %arg6[%c0_32] : memref<3xf32, #tpu.memory_space<smem>>
    %82 = vector.broadcast %81 : f32 to vector<16x2xf32>
    %83 = arith.mulf %80, %82 : vector<16x2xf32>
    %84 = arith.addf %66, %83 : vector<16x2xf32>
    %c1 = arith.constant 1 : index
    %85 = memref.load %arg6[%c1] : memref<3xf32, #tpu.memory_space<smem>>
    %86 = vector.broadcast %85 : f32 to vector<16x2xf32>
    %87 = arith.mulf %65, %86 : vector<16x2xf32>
    %88 = arith.addf %84, %87 : vector<16x2xf32>
    %c1_i32_33 = arith.constant 1 : i32
    %89 = vector.broadcast %c1_i32_33 : i32 to vector<16x1xi32>
    %90 = arith.addi %2, %89 : vector<16x1xi32>
    %c0_i32_34 = arith.constant 0 : i32
    %91 = vector.broadcast %c0_i32_34 : i32 to vector<16x1xi32>
    %92 = arith.cmpi sge, %90, %91 : vector<16x1xi32>
    %c1_i32_35 = arith.constant 1 : i32
    %93 = vector.broadcast %c1_i32_35 : i32 to vector<16x1xi32>
    %94 = arith.addi %2, %93 : vector<16x1xi32>
    %c16_i32_36 = arith.constant 16 : i32
    %95 = vector.broadcast %c16_i32_36 : i32 to vector<16x1xi32>
    %96 = arith.cmpi slt, %94, %95 : vector<16x1xi32>
    %97 = arith.andi %92, %96 : vector<16x1xi1>
    %c15_i32_37 = arith.constant 15 : i32
    %98 = tpu.dynamic_rotate %65 by %c15_i32_37 dim 0 : vector<16x2xf32>, i32 -> vector<16x2xf32>
    %cst_38 = arith.constant 0.000000e+00 : f32
    %99 = vector.shape_cast %97 : vector<16x1xi1> to vector<16x1xi1>
    %100 = vector.broadcast %99 : vector<16x1xi1> to vector<16x2xi1>
    %101 = vector.broadcast %cst_38 : f32 to vector<16x2xf32>
    %102 = arith.select %100, %98, %101 : vector<16x2xi1>, vector<16x2xf32>
    %c2 = arith.constant 2 : index
    %103 = memref.load %arg6[%c2] : memref<3xf32, #tpu.memory_space<smem>>
    %104 = vector.broadcast %103 : f32 to vector<16x2xf32>
    %105 = arith.mulf %102, %104 : vector<16x2xf32>
    %106 = arith.addf %88, %105 : vector<16x2xf32>
    %107 = arith.negf %106 : vector<16x2xf32>
    %108 = math.exp %107 : vector<16x2xf32>
    %cst_39 = arith.constant 1.000000e+00 : f32
    %109 = vector.broadcast %cst_39 : f32 to vector<16x2xf32>
    %110 = arith.addf %109, %108 : vector<16x2xf32>
    %111 = arith.divf %109, %110 : vector<16x2xf32>
    %c0_40 = arith.constant 0 : index
    %c0_41 = arith.constant 0 : index
    %112 = vector.load %arg8[%c0_40, %c0_41] : memref<2x16xf32, #tpu.memory_space<vmem>>, vector<2x16xf32>
    %cst_42 = arith.constant dense<0.000000e+00> : vector<16x16xf32>
    %113 = tpu.matmul %111, %112, %cst_42 {dimension_numbers = #tpu.dot_dimension_numbers<[1], [0], [0], [1], [0, 0, 1, 1], [], []>} : vector<16x2xf32>, vector<2x16xf32>, vector<16x16xf32> -> vector<16x16xf32>
    %114 = arith.mulf %113, %63 : vector<16x16xf32>
    %c0_43 = arith.constant 0 : index
    %c0_44 = arith.constant 0 : index
    %115 = vector.load %arg9[%c0_43, %c0_44] : memref<16x128xf32, #tpu.memory_space<vmem>>, vector<16x128xf32>
    %cst_45 = arith.constant dense<0.000000e+00> : vector<16x128xf32>
    %116 = tpu.matmul %0, %115, %cst_45 {dimension_numbers = #tpu.dot_dimension_numbers<[0], [0], [1], [1], [0, 1, 1, 1], [], []>} : vector<16x16xf32>, vector<16x128xf32>, vector<16x128xf32> -> vector<16x128xf32>
    %c0_46 = arith.constant 0 : index
    %c0_47 = arith.constant 0 : index
    %117 = vector.load %arg10[%c0_46, %c0_47] : memref<16x128xf32, #tpu.memory_space<vmem>>, vector<16x128xf32>
    %cst_48 = arith.constant dense<0.000000e+00> : vector<16x128xf32>
    %118 = tpu.matmul %114, %117, %cst_48 {dimension_numbers = #tpu.dot_dimension_numbers<[0], [0], [1], [1], [0, 1, 1, 1], [], []>} : vector<16x16xf32>, vector<16x128xf32>, vector<16x128xf32> -> vector<16x128xf32>
    %119 = arith.addf %116, %118 : vector<16x128xf32>
    %c0_49 = arith.constant 0 : index
    %c0_50 = arith.constant 0 : index
    %120 = vector.load %arg11[%c0_49, %c0_50] : memref<1x128xf32, #tpu.memory_space<vmem>>, vector<1x128xf32>
    %121 = vector.broadcast %120 : vector<1x128xf32> to vector<16x128xf32>
    %122 = arith.addf %119, %121 : vector<16x128xf32>
    %c0_51 = arith.constant 0 : index
    %c0_52 = arith.constant 0 : index
    %123 = vector.load %arg12[%c0_51, %c0_52] : memref<16x128xf32, #tpu.memory_space<vmem>>, vector<16x128xf32>
    tpu.vector_store %arg12[%c0_51, %c0_52], %122 {strides = array<i32>} : memref<16x128xf32, #tpu.memory_space<vmem>>, vector<16x128xf32>,
    return
  }
  func.func @transform_0(%arg0: i32) -> (i32, i32) {
    %c0_i32 = arith.constant 0 : i32
    %c0_i32_0 = arith.constant 0 : i32
    return %c0_i32, %arg0 : i32, i32
  }
  func.func @transform_1(%arg0: i32) -> (i32, i32) {
    %c0_i32 = arith.constant 0 : i32
    %c0_i32_0 = arith.constant 0 : i32
    %c0_i32_1 = arith.constant 0 : i32
    return %c0_i32, %c0_i32_0 : i32, i32
  }
  func.func @transform_2(%arg0: i32) -> (i32, i32) {
    %c0_i32 = arith.constant 0 : i32
    %c0_i32_0 = arith.constant 0 : i32
    %c0_i32_1 = arith.constant 0 : i32
    return %c0_i32, %c0_i32_0 : i32, i32
  }
  func.func @transform_3(%arg0: i32) -> (i32, i32) {
    %c0_i32 = arith.constant 0 : i32
    %c0_i32_0 = arith.constant 0 : i32
    %c0_i32_1 = arith.constant 0 : i32
    return %c0_i32, %c0_i32_0 : i32, i32
  }
  func.func @transform_4(%arg0: i32) -> (i32, i32) {
    %c0_i32 = arith.constant 0 : i32
    %c0_i32_0 = arith.constant 0 : i32
    %c0_i32_1 = arith.constant 0 : i32
    return %c0_i32, %c0_i32_0 : i32, i32
  }
  func.func @transform_5(%arg0: i32) -> i32 {
    %c0_i32 = arith.constant 0 : i32
    %c0_i32_0 = arith.constant 0 : i32
    return %c0_i32 : i32
  }
  func.func @transform_6(%arg0: i32) -> (i32, i32) {
    %c0_i32 = arith.constant 0 : i32
    %c0_i32_0 = arith.constant 0 : i32
    %c0_i32_1 = arith.constant 0 : i32
    return %c0_i32, %c0_i32_0 : i32, i32
  }
  func.func @transform_7(%arg0: i32) -> (i32, i32) {
    %c0_i32 = arith.constant 0 : i32
    %c0_i32_0 = arith.constant 0 : i32
    %c0_i32_1 = arith.constant 0 : i32
    return %c0_i32, %c0_i32_0 : i32, i32
  }
  func.func @transform_8(%arg0: i32) -> (i32, i32) {
    %c0_i32 = arith.constant 0 : i32
    %c0_i32_0 = arith.constant 0 : i32
    %c0_i32_1 = arith.constant 0 : i32
    return %c0_i32, %c0_i32_0 : i32, i32
  }
  func.func @transform_9(%arg0: i32) -> (i32, i32) {
    %c0_i32 = arith.constant 0 : i32
    %c0_i32_0 = arith.constant 0 : i32
    %c0_i32_1 = arith.constant 0 : i32
    return %c0_i32, %c0_i32_0 : i32, i32
  }
  func.func @transform_10(%arg0: i32) -> (i32, i32) {
    %c0_i32 = arith.constant 0 : i32
    %c0_i32_0 = arith.constant 0 : i32
    %c0_i32_1 = arith.constant 0 : i32
    return %c0_i32, %c0_i32_0 : i32, i32
  }
  func.func @transform_11(%arg0: i32) -> (i32, i32) {
    %c0_i32 = arith.constant 0 : i32
    %c0_i32_0 = arith.constant 0 : i32
    return %arg0, %c0_i32 : i32, i32
  }
}

</mosaic_0001>

<bundles_post_ra>
// kernel: tpu_custom_call.1
= control target key start
LH: loop header
LB: loop body
LE: loop exit
PB: predicated region body
PF: predicated region fallthrough
CT: control target
= control target key end

     0   :  { %16 = vsyncpa [#allocation3], 0  ;;  %s1208_s0 = inlined_call_operand.vmem [shape: f32[16,16], index: 0, kind: input, shape index: {}]   ;;  %s1209_s1 = inlined_call_operand.hbm [shape: f32[3,16], index: 1, kind: input, shape index: {}]   ;;  %s1210_s2 = inlined_call_operand.hbm [shape: f32[1,16], index: 2, kind: input, shape index: {}]   ;;  %s1211_s3 = inlined_call_operand.vmem [shape: f32[16,8], index: 3, kind: input, shape index: {}]   ;;  %s1212_s4 = inlined_call_operand.vmem [shape: f32[8,16], index: 4, kind: input, shape index: {}]   ;;  %s1213_s5 = inlined_call_operand.hbm [shape: f32[3], index: 5, kind: input, shape index: {}]   ;;  %s1214_s6 = inlined_call_operand.vmem [shape: f32[16,2], index: 6, kind: input, shape index: {}]   ;;  %s1215_s7 = inlined_call_operand.vmem [shape: f32[2,16], index: 7, kind: input, shape index: {}]   ;;  %s1216_s8 = inlined_call_operand.vmem [shape: f32[16,128], index: 8, kind: input, shape index: {}]   ;;  %s1217_s9 = inlined_call_operand.vmem [shape: f32[16,128], index: 9, kind: input, shape index: {}]   ;;  %s1218_s10 = inlined_call_operand.vmem [shape: f32[1,128], index: 10, kind: input, shape index: {}]   ;;  %s1219_s11 = inlined_call_operand.hbm [shape: f32[16,128], index: 11, kind: output, shape index: {}]  }
   0x1   :  { %17 = vsyncpa [#allocation7], 0 }
   0x2   :  { %18 = vsyncpa [#allocation5], 0 }
   0x3   :  { %19 = vsyncpa [#allocation4], 0  ;;  %s998_s17 = smov [#allocation2]   ;;  %s999_s19 = smov [#allocation6]  }
   0x4   :  { %s28_s18 = sshll.u32 %s998_s17, 4  ;;  %s38_s20 = sshll.u32 %s999_s19, 4  ;;  %s29_s18 = int_to_ptr.vmem [resolvable:$true] %s28_s18  ;;  %s39_s20 = int_to_ptr.vmem [resolvable:$true] %s38_s20 }
   0x5   :  { %s914_s23 = scalar_lea.hbm %s1209_s1, 64 }
   0x6   :  { %p915_p0 = scmp.ne.s32.totalorder %s1209_s1, %s914_s23  ;;  %p918_p1 = scmp.lt.u32.totalorder %s914_s23, %s1209_s1 }
   0x8   :  { %p920_p2 = pnand %p918_p1, %p915_p0 }
   0xa   :  { %923 = shalt.err (!%p920_p2)
}
   0xb   :  { %s924_s28 = scalar_lea.vmem %s29_s18, 64  ;;  %p929_p4 = scmp.lt.s32.totalorder %s29_s18, %s29_s18 }
   0xc   :  { %p925_p3 = scmp.ne.s32.totalorder %s29_s18, %s924_s28  ;;  %p930_p5 = scmp.lt.s32.totalorder %s924_s28, %s924_s28 }
   0xe   :  { %p931_p6 = por %p930_p5, %p929_p4 }
  0x10   :  { %p932_p7 = pnand %p931_p6, %p925_p3 }
  0x12   :  { %935 = shalt.err (!%p932_p7)
}
  0x13   :  { %31 = dma.hbm_to_vmem [thread:$0]  %s1209_s1, 64, %s29_s18, [#allocation3]  }
  0x14   :  { %s936_s14 = scalar_lea.hbm %s1210_s2, 16 }
  0x15   :  { %p937_p8 = scmp.ne.s32.totalorder %s1210_s2, %s936_s14  ;;  %p940_p9 = scmp.lt.u32.totalorder %s936_s14, %s1210_s2 }
  0x17   :  { %p942_p10 = pnand %p940_p9, %p937_p8 }
  0x19   :  { %945 = shalt.err (!%p942_p10)
}
  0x1a   :  { %s946_s21 = scalar_lea.vmem %s39_s20, 16  ;;  %s950_s22 = scalar_lea.vmem %s39_s20, 32 }
  0x1b   :  { %p947_p11 = scmp.ne.s32.totalorder %s39_s20, %s946_s21  ;;  %p951_p12 = scmp.lt.s32.totalorder %s39_s20, %s39_s20 }
  0x1c   :  { %p952_p13 = scmp.lt.s32.totalorder %s950_s22, %s946_s21 }
  0x1e   :  { %p953_p0 = por %p952_p13, %p951_p12 }
  0x20   :  { %p954_p1 = pnand %p953_p0, %p947_p11 }
  0x22   :  { %957 = shalt.err (!%p954_p1)
}
  0x23   :  { %41 = dma.hbm_to_vmem [thread:$0]  %s1210_s2, 16, %s39_s20, [#allocation7]  }
  0x24   :  { %s958_s25 = scalar_lea.hbm %s1213_s5, 16 }
  0x25   :  { %p959_p2 = scmp.ne.s32.totalorder %s1213_s5, %s958_s25  ;;  %p962_p3 = scmp.lt.u32.totalorder %s958_s25, %s1213_s5 }
  0x27   :  { %p964_p4 = pnand %p962_p3, %p959_p2 }
  0x29   :  { %967 = shalt.err (!%p964_p4)
}
  0x2a   :  { %s1000_s30 = smov [#allocation8]  }
  0x2b   :  { %53 = dma.hbm_to_smem %s1213_s5, 16, %s1000_s30, [#allocation5]  }
  0x2c   :  { %990 = dma.done.wait [#allocation3], 64  }
  0x2d   :  { %991 = vsyncadd [#allocation3], 4294967232 }
  0x2e   :  { %992 = dma.done.wait [#allocation7], 16  }
  0x2f   :  { %993 = vsyncadd [#allocation7], 4294967280 }
  0x30   :  { %994 = dma.done.wait [#allocation5], 16  }
  0x31   :  { %995 = vsyncadd [#allocation5], 4294967280 }
  0x32   :  { %73 = sfence }
  0x33   :  { %v163_v0 = vld [vmem:[%s1211_s3] sm:$0xff]  ;;  %v164_v1 = vld [vmem:[%s1211_s3 + $0x8] sm:$0xff]  ;;  %v77_v3 = vlaneseq  ;;  %v1001_v4 = vmov 0.0|0.0   ;;  %vm1002_vm0 = vmmov 0   ;;  %v1003_v6 = vmov 0.0   ;;  %s806_s23 = sld [smem:[#allocation8 + $0x1]] }
  0x34   :  { %v74_v2 = vld [vmem:[%s1208_s0] sm:$0xff]  ;;  %876 = vmatprep.subr.bf16.mxu0 %v1001_v4  ;;  %v877_v5 = vpack.c.bf16 %v164_v1, %v163_v0  ;;  %842 = vmatprep.mubr.msk.f32.mxu0 %vm1002_vm0, %v1003_v6  ;;  %v75_v7 = vld [vmem:[%s1208_s0 + $0x8] sm:$0xff]  ;;  %vm151_vm5 = vcmask 130048   ;;  %vm240_vm6 = vcmask 64512   ;;  %vm459_vm7 = vcmask 1041408   ;;  %s415_s24 = sld [smem:[#allocation8]] }
  0x35   :  { %v88_v8 = vrot.slane %v74_v2, 7  ;;  %v1116_v9 = vshrl.u32 %v77_v3, 7  ;;  %v89_v10 = vrot.slane %v75_v7, 7  ;;  %v76_v11 = vld [vmem:[#allocation2] sm:$0x7]  ;;  %v123_v12 = vrot.slane %v74_v2, 1 }
  0x36   :  { %878 = vmatpush3.bf16.msra.mxu0 %v877_v5  ;;  %v124_v13 = vrot.slane %v75_v7, 1  ;;  %657 = vxpose.xlu1.b32.start [1/2] (short) (narrow) %v74_v2, 16  ;;  %v800_v37 = vld [vmem:[#allocation6] ss:$0 sm:$0xff]  ;;  %v327_v57 = vld [vmem:[%s1214_s6 + $0x8] sm:$0xff]  ;;  %s807_s25 = sld [smem:[#allocation8 + $0x2]] }
  0x37   :  { %v79_v14 = vadd.s32 8, %v1116_v9  ;;  %v1120_v15 = vadd.s32 4294967295, %v1116_v9  ;;  %vm90_vm1 = vcmp.lt.s32.totalorder %v1116_v9, 1  ;;  %v101_v16 = vsub.s32 0, %v1116_v9  ;;  %845 = vmatprep.subr.mxu0 %v1003_v6  ;;  %v239_v52 = vld [vmem:[%s1212_s4] sm:$0xff] }
  0x38   :  { %v91_v17 = vsel %vm90_vm1, %v88_v8, %v89_v10  ;;  %v92_v18 = vsel %vm90_vm1, %v89_v10, %v88_v8  ;;  %v109_v19 = vsub.s32 1, %v1116_v9  ;;  %vm125_vm2 = vcmp.lt.s32.totalorder %v1116_v9, 7  ;;  %v326_v56 = vld [vmem:[%s1214_s6] sm:$0xff] }
  0x39   :  { %vm82_vm3 = vcmp.ge.s32.totalorder %v1120_v15, 0  ;;  %v102_v20 = vrot.slane %v76_v11, %v101_v16  ;;  %v1133_v21 = vadd.s32 1, %v79_v14  ;;  %v127_v24 = vsel %vm125_vm2, %v124_v13, %v123_v12  ;;  %v451_v4 = vld [vmem:[%s1215_s7] sm:$0x3] }
  0x3a   :  { %v97_v22 = vsel %vm82_vm3, %v92_v18, 0.0  ;;  %v110_v23 = vrot.slane %v76_v11, %v109_v19  ;;  %v136_v25 = vsub.s32 2, %v1116_v9  ;;  %658 = vxpose.xlu1.b32.end [2/2] (short) (narrow) %v75_v7, 16  ;;  %v126_v28 = vsel %vm125_vm2, %v123_v12, %v124_v13 }
  0x3b   :  { %v103_v26 = vmul.f32 %v102_v20, %v97_v22  ;;  %v104_v27 = vmul.f32 %v102_v20, %v91_v17  ;;  %vm120_vm4 = vcmp.lt.s32.totalorder %v1133_v21, 16  ;;  %v879_v58 = vpack.c.bf16 %v327_v57, %v326_v56 }
  0x3c   :  { %v111_v29 = vmul.f32 %v110_v23, %v74_v2  ;;  %v112_v30 = vmul.f32 %v110_v23, %v75_v7  ;;  %v133_v31 = vsel %vm120_vm4, %v127_v24, 0.0  ;;  %v137_v32 = vrot.slane %v76_v11, %v136_v25 }
  0x3d   :  { %880 = vmatprep.subr.bf16.mxu1 %v879_v58  ;;  %v422_v10 = vstv %s806_s23  ;;  %v416_v12 = vstv %s415_s24  ;;  %v434_v14 = vstv %s807_s25  ;;  %vm452_vm8 = vcmask 15360  }
  0x3e   :  { %v113_v33 = vadd.f32 %v111_v29, %v103_v26  ;;  %v114_v34 = vadd.f32 %v112_v30, %v104_v27  ;;  %v138_v35 = vmul.f32 %v137_v32, %v126_v28  ;;  %v139_v36 = vmul.f32 %v137_v32, %v133_v31  ;;  %882 = vmatpush3.bf16.msra.mxu1 %v879_v58 }
  0x40   :  { %v140_v38 = vadd.f32 %v138_v35, %v113_v33  ;;  %v141_v39 = vadd.f32 %v139_v36, %v114_v34 }
  0x42   :  { %v149_v40 = vadd.f32 %v800_v37, %v140_v38  ;;  %v150_v41 = vadd.f32 %v800_v37, %v141_v39  ;;  %v542_v38 = vld [vmem:[%s1217_s9] sm:$0xff]  ;;  %v543_v39 = vld [vmem:[%s1217_s9 + $0x8] sm:$0xff] }
  0x44   :  { %v152_v42 = vsel %vm151_vm5, %v149_v40, 0.0  ;;  %v153_v43 = vsel %vm151_vm5, %v150_v41, 0.0 }
  0x45   :  { %v154_v44 = vadd.f32 %v153_v43, %v152_v42 }
  0x47   :  { %v155_v45 = vrot.slane %v154_v44, 4 }
  0x49   :  { %v156_v46 = vadd.f32 %v155_v45, %v154_v44  ;;  %v540_v44 = vld [vmem:[%s1216_s8] sm:$0xff]  ;;  %v541_v45 = vld [vmem:[%s1216_s8 + $0x8] sm:$0xff]  ;;  %s1004_s8 = smov [#allocation9]  }
  0x4a   :  { %s786_s20 = sshll.u32 %s1004_s8, 4  ;;  %s787_s20 = int_to_ptr.vmem [resolvable:$true] %s786_s20 }
  0x4b   :  { %v157_v47 = vrot.slane %v156_v46, 2  ;;  %s968_s14 = scalar_lea.vmem %s787_s20, 256  ;;  %p973_p6 = scmp.lt.s32.totalorder %s787_s20, %s787_s20 }
  0x4c   :  { %p969_p5 = scmp.ne.s32.totalorder %s787_s20, %s968_s14  ;;  %p974_p7 = scmp.lt.s32.totalorder %s968_s14, %s968_s14 }
  0x4d   :  { %v158_v48 = vadd.f32 %v157_v47, %v156_v46  ;;  %v887_v47 = vpack.c.bf16 %v541_v45, %v540_v44 }
  0x4e   :  { %p975_p8 = por %p974_p7, %p973_p6 }
  0x4f   :  { %v159_v49 = vrot.slane %v158_v48, 1 }
  0x50   :  { %p976_p9 = pnand %p975_p8, %p969_p5 }
  0x51   :  { %v160_v50 = vadd.f32 %v159_v49, %v158_v48 }
  0x53   :  { %v162_v51 = vmul.f32 0.0625, %v160_v50 }
  0x55   :  { %843 = vmatmul.mubr.msk.f32.vlgmr.msra.gmra.mrb[0].mxu0 %vm151_vm5, %v162_v51 }
  0x56   :  { %846 = vmatpush3.msra.mxu0 %v239_v52  ;;  %847 = vmatprep.mubr.msk.f32.mxu0 %vm1002_vm0, %v1003_v6  ;;  %v817_v52 = vld [vmem:[%s1218_s10] ss:$0 sm:$0xff] }
  0x57   :  { %857 = vmatprep.subr.msk.mxu0 %vm459_vm7, %v451_v4 }
  0xb6   :  { %v673_v49 = vpop.trf.xlu1 }
  0xba   :  { %v674_v51 = vpop.trf.xlu1 }
 0x128   :  { %v234_v53 = vpop.f32.mrb[0].mxu0 }
 0x129   :  { %v238_v54 = vmax.f32 %v234_v53, 0.0  ;;  %v844_v55 = vpop.f32.mrb[1].mxu0 }
 0x12b   :  { %848 = vmatmul.mubr.msk.f32.vlgmr.msra.gmra.mrb[2].mxu0 %vm240_vm6, %v238_v54 }
 0x12c   :  { %858 = vmatpush3.msk.msra.mxu0 %vm459_vm7, %v451_v4 }
 0x1fe   :  { %v310_v59 = vpop.f32.mrb[2].mxu0 }
 0x1ff   :  { %v803_v60 = vmul.f32 -1.442695, %v310_v59  ;;  %v849_v61 = vpop.f32.mrb[3].mxu0 }
 0x201   :  { %902 = vpow2.f32 %v803_v60 }
 0x20b   :  { %v903_v62 = vpop.eup %902 }
 0x20c   :  { %v317_v63 = vadd.f32 1.0, %v903_v62 }
 0x20e   :  { %904 = vrcp.f32 %v317_v63 }
 0x218   :  { %v905_v0 = vpop.eup %904 }
 0x219   :  { %v323_v1 = vrot.slane %v905_v0, %v101_v16 }
 0x21b   :  { %v324_v2 = vmul.f32 %v323_v1, %v149_v40  ;;  %v325_v3 = vmul.f32 %v323_v1, %v150_v41  ;;  %v883_v40 = vpack.c.bf16 %v543_v39, %v542_v38 }
 0x21d   :  { %854 = vmatprep.mubr.msk.f32.mxu1 %vm151_vm5, %v324_v2  ;;  %884 = vmatprep.subr.bf16.mxu1 %v883_v40 }
 0x21e   :  { %855 = vmatmul.mubr.msk.f32.vlgmr.msra.gmra.mrb[0].mxu1 %vm151_vm5, %v325_v3 }
 0x21f   :  { %886 = vmatpush3.bf16.msra.mxu1 %v883_v40 }
 0x220   :  { %888 = vmatprep.subr.bf16.mxu1 %v887_v47 }
 0x2f1   :  { %v856_v5 = vpop.f32.mrb[0].mxu1 }
 0x2f2   :  { %v410_v6 = vrot.slane %v856_v5, 7  ;;  %v428_v7 = vrot.slane %v856_v5, 1  ;;  %v400_v8 = vpop.f32.mrb[1].mxu1  ;;  %v424_v20 = vmul.f32 %v856_v5, %v422_v10 }
 0x2f3   :  { %v409_v11 = vrot.slane %v400_v8, 7  ;;  %v427_v13 = vrot.slane %v400_v8, 1  ;;  %v423_v26 = vmul.f32 %v422_v10, %v400_v8 }
 0x2f5   :  { %v411_v16 = vsel %vm90_vm1, %v409_v11, %v410_v6  ;;  %v412_v17 = vsel %vm90_vm1, %v410_v6, %v409_v11  ;;  %v429_v18 = vsel %vm125_vm2, %v427_v13, %v428_v7  ;;  %v430_v19 = vsel %vm125_vm2, %v428_v7, %v427_v13 }
 0x2f6   :  { %v413_v22 = vsel %vm82_vm3, %v412_v17, 0.0  ;;  %v418_v23 = vmul.f32 %v416_v12, %v411_v16  ;;  %v432_v24 = vsel %vm120_vm4, %v430_v19, 0.0  ;;  %v435_v30 = vmul.f32 %v434_v14, %v429_v18 }
 0x2f7   :  { %v417_v25 = vmul.f32 %v416_v12, %v413_v22  ;;  %v436_v27 = vmul.f32 %v434_v14, %v432_v24 }
 0x2f8   :  { %v426_v28 = vadd.f32 %v424_v20, %v418_v23 }
 0x2f9   :  { %v425_v29 = vadd.f32 %v423_v26, %v417_v25 }
 0x2fa   :  { %v438_v31 = vadd.f32 %v436_v27, %v426_v28 }
 0x2fb   :  { %v437_v32 = vadd.f32 %v435_v30, %v425_v29 }
 0x2fc   :  { %v809_v33 = vmul.f32 -1.442695, %v438_v31 }
 0x2fd   :  { %v808_v34 = vmul.f32 -1.442695, %v437_v32 }
 0x2fe   :  { %906 = vpow2.f32 %v809_v33 }
 0x2ff   :  { %908 = vpow2.f32 %v808_v34 }
 0x308   :  { %v907_v9 = vpop.eup %906 }
 0x309   :  { %v909_v35 = vpop.eup %908  ;;  %v446_v15 = vadd.f32 1.0, %v907_v9 }
 0x30a   :  { %v445_v36 = vadd.f32 1.0, %v909_v35 }
 0x30c   :  { %910 = vrcp.f32 %v445_v36 }
 0x30d   :  { %912 = vrcp.f32 %v446_v15 }
 0x316   :  { %v911_v21 = vpop.eup %910 }
 0x317   :  { %v913_v37 = vpop.eup %912  ;;  %859 = vmatprep.mubr.msk.f32.mxu0 %vm452_vm8, %v911_v21 }
 0x318   :  { %860 = vmatmul.mubr.msk.f32.vlgmr.msra.gmra.mrb[4].mxu0 %vm452_vm8, %v913_v37 }
 0x3eb   :  { %v861_v41 = vpop.f32.mrb[4].mxu0 }
 0x3ec   :  { %v529_v42 = vpop.f32.mrb[5].mxu0  ;;  %v539_v46 = vmul.f32 %v861_v41, %v325_v3 }
 0x3ed   :  { %v538_v43 = vmul.f32 %v529_v42, %v324_v2 }
 0x3ef   :  { %544 = vxpose.xlu0.b32.start [1/2] (short) (narrow) %v538_v43, 16 }
 0x3f3   :  { %545 = vxpose.xlu0.b32.end [2/2] (short) (narrow) %v539_v46, 16 }
 0x46f   :  { %v560_v48 = vpop.trf.xlu0 }
 0x470   :  { %866 = vmatprep.mubr.msk.f32.mxu1 %vm151_vm5, %v560_v48 }
 0x473   :  { %v561_v50 = vpop.trf.xlu0 }
 0x474   :  { %867 = vmatmul.mubr.msk.f32.vlgmr.msra.gmra.mrb[2].mxu1 %vm151_vm5, %v561_v50 }
 0x475   :  { %890 = vmatpush3.bf16.msra.mxu1 %v887_v47  ;;  %873 = vmatprep.mubr.msk.f32.mxu1 %vm151_vm5, %v673_v49 }
 0x47c   :  { %874 = vmatmul.mubr.msk.f32.vlgmr.msra.gmra.mrb[2].mxu1 %vm151_vm5, %v674_v51 }
 0x54f   :  { %v875_v53 = vpop.f32.mrb[2].mxu1 }
 0x550   :  { %v778_v54 = vadd.f32 %v875_v53, %v817_v52  ;;  %v761_v55 = vpop.f32.mrb[3].mxu1 }
 0x551   :  { %v777_v56 = vadd.f32 %v817_v52, %v761_v55 }
 0x552   :  { %780 = vst [vmem:[#allocation9 + $0x8] sm:$0xff] %v778_v54 }
 0x553   :  { %779 = vst [vmem:[#allocation9] sm:$0xff] %v777_v56 }
 0x554   :  { %979 = shalt.err (!%p976_p9)
}
 0x555   :  { %s980_s10 = scalar_lea.hbm %s1219_s11, 256 }
 0x556   :  { %p981_p10 = scmp.ne.s32.totalorder %s1219_s11, %s980_s10  ;;  %p984_p11 = scmp.lt.u32.totalorder %s980_s10, %s1219_s11 }
 0x558   :  { %p986_p12 = pnand %p984_p11, %p981_p10 }
 0x55a   :  { %989 = shalt.err (!%p986_p12)
}
 0x55b   :  { %s1005_s3 = smov 128   ;;  %s1006_s21 = smov 8  }
 0x55c   :  { %792 = dma.vmem_to_hbm [thread:$0]  %s787_s20, 256, %s1219_s11, [#allocation4], %s1005_s3, %s1005_s3, %s1006_s21  }
 0x55d   :  { %996 = dma.done.wait [#allocation4], 256  }
 0x55e   :  { %997 = vsyncadd [#allocation4], 4294967040 }
 0x55f   :  { %796 = vsyncpa [#allocation3], 1 }
 0x560   :  { %797 = vsyncpa [#allocation7], 1 }
 0x561   :  { %798 = vsyncpa [#allocation4], 1 }
 0x562   :  { %799 = vsyncpa [#allocation5], 1 }

</bundles_post_ra>
